<compile_context>
chip_gen: v6e
topology: v6e:2x2x1
jax: 0.10.0
libtpu: 0.0.40
codegen_flags: <defaults>
</compile_context>

<pallas_src>
import functools

import jax
import jax.numpy as jnp
from jax.experimental import pallas as pl
from jax.experimental.pallas import tpu as pltpu


def _round_up(x, m):
    return (x + m - 1) // m * m


def _choose_bn(n, c_pad, hw, itemsize, budget):
    """Largest bn (<=8, dividing n) that (a) leaves >=2 parallel batch groups
    when N >= 2 (v7x has 2 TensorCores) and (b) keeps the per-step DMA rows
    long (>= ~1024 lanes, or the full padded HW) under the byte budget."""
    target_lanes = min(_round_up(hw, 128), 1024)
    best = 1
    for cand in range(1, min(n, 8) + 1):
        if n % cand:
            continue
        if n >= 2 and n // cand < 2:
            continue  # keep the parallel axis >= 2 so both TCs get DMAs
        if budget // (cand * c_pad * itemsize) >= target_lanes:
            best = cand
    return best


def _choose_hw_tiling(hw, bn, c_pad, itemsize, budget):
    """Return (hw_tile, hw_pad): a multiple-of-128 lane tile derived from the
    byte budget, and the padded spatial extent it evenly covers."""
    bytes_per_lane = bn * c_pad * itemsize
    max_lanes = max(128, (budget // max(1, bytes_per_lane)) // 128 * 128)
    hw128 = _round_up(hw, 128)
    if hw128 <= max_lanes:
        return hw128, hw128  # single chunk per batch group

    # Cost model: total padded bytes moved + per-grid-step overhead
    # (~0.35 us ~= moving ~0.5 MB of HBM traffic).
    overhead_bytes = 512 * 1024
    best_t, best_cost = 128, None
    t = max_lanes
    while t >= 128:
        steps = -(-hw // t)
        cost = steps * t * bytes_per_lane + steps * overhead_bytes
        if best_cost is None or cost < best_cost:
            best_t, best_cost = t, cost
        t -= 128
    return best_t, _round_up(hw, best_t)


def make_style_kernel(x_ref, o_ref, acc_ref, *, inv_hw):
    # x_ref:   (bn, C, hw_tile) input chunk for this (batch-group, hw-chunk)
    # o_ref:   (bn, C, 1)       normalized style tile (written at k == last)
    # acc_ref: (bn, C, 1) f32   running spatial sum (lives across the k axis)
    k = pl.program_id(1)

    @pl.when(k == 0)
    def _init():
        acc_ref[...] = jnp.zeros_like(acc_ref)

    # Lane-axis partial sum widened to f32; keepdims keeps C on sublanes so
    # the result matches the accumulator layout (no per-step relayout).
    acc_ref[...] += jnp.sum(x_ref[...], axis=-1, keepdims=True,
                            dtype=jnp.float32)

    @pl.when(k == pl.num_programs(1) - 1)
    def _finalize():
        style = acc_ref[...] * inv_hw                          # (bn, C, 1) avg pool
        sq = jnp.sum(style * style, axis=1, keepdims=True)     # (bn, 1, 1)
        # rsqrt goes to the EUP slot; equivalent to style / sqrt(sum(style^2)).
        o_ref[...] = (style * jax.lax.rsqrt(sq)).astype(o_ref.dtype)


def make_style(x, *, vmem_budget_bytes=8 * 1024 * 1024):
    """x: (N, C, H, W) float array. Returns (N, C) L2-normalized style."""
    n, c, h, w = x.shape
    hw = h * w
    itemsize = x.dtype.itemsize
    sublane = max(8, 32 // itemsize)           # sublane multiple for this dtype
    c_pad = _round_up(c, sublane)              # VMEM footprint uses padded C

    bn = _choose_bn(n, c_pad, hw, itemsize, vmem_budget_bytes)
    hw_tile, hw_pad = _choose_hw_tiling(hw, bn, c_pad, itemsize,
                                        vmem_budget_bytes)

    x_flat = x.reshape(n, c, hw)               # view-only reshape
    if hw_pad != hw:
        # Zero-pad the spatial axis so every block is a legal multiple-of-128
        # tile; zeros don't change the sum and we still divide by the true HW.
        x_flat = jnp.pad(x_flat, ((0, 0), (0, 0), (0, hw_pad - hw)))

    grid = (n // bn, hw_pad // hw_tile)        # (parallel, spatial reduction)
    block_bytes = bn * c_pad * hw_tile * itemsize

    cost = pl.CostEstimate(
        flops=n * c * hw + 4 * n * c,
        transcendentals=n,                     # one rsqrt per batch row
        bytes_accessed=n * c * hw_pad * itemsize + n * c * itemsize,
    )

    kernel = functools.partial(make_style_kernel, inv_hw=1.0 / hw)
    out = pl.pallas_call(
        kernel,
        out_shape=jax.ShapeDtypeStruct((n, c, 1), x.dtype),
        grid=grid,
        in_specs=[pl.BlockSpec((bn, c, hw_tile), lambda i, k: (i, 0, k))],
        out_specs=pl.BlockSpec((bn, c, 1), lambda i, k: (i, 0, 0)),
        scratch_shapes=[pltpu.VMEM((bn, c, 1), jnp.float32)],
        compiler_params=pltpu.CompilerParams(
            dimension_semantics=("parallel", "arbitrary"),
            vmem_limit_bytes=min(60 * 1024 * 1024,
                                 max(32 * 1024 * 1024, 3 * block_bytes)),
        ),
        cost_estimate=cost,
    )(x_flat)
    return out.reshape(n, c)                   # drop trailing size-1 dim (free)


if __name__ == "__main__":
    key = jax.random.PRNGKey(0)
    x = jax.random.normal(key, (2, 4, 16, 16), dtype=jnp.float32)

    out = make_style(x)
    jax.block_until_ready(out)

    # Pure-JAX reference for correctness.
    ref_pool = jnp.mean(x, axis=(-2, -1))                          # (N, C)
    ref = ref_pool / jnp.sqrt(jnp.sum(ref_pool ** 2, axis=1, keepdims=True))

    assert out.shape == (2, 4), out.shape
    assert jnp.allclose(out, ref, atol=1e-5, rtol=1e-5), "mismatch vs reference"

    print("KERNEL_OK")
</pallas_src>

<mosaic_0001>
module attributes {stable_mosaic.version = 11 : i64} {
  func.func @make_style_kernel(%arg0: i32, %arg1: i32, %arg2: memref<1x4x256xf32, #tpu.memory_space<vmem>>, %arg3: memref<1x4x1xf32, #tpu.memory_space<vmem>>, %arg4: memref<1x4x1xf32, #tpu.memory_space<vmem>>) attributes {dimension_semantics = [#tpu.dimension_semantics<parallel>, #tpu.dimension_semantics<arbitrary>], iteration_bounds = array<i64: 2, 1>, scalar_prefetch = 0 : i64, scratch_operands = 1 : i64, tpu.core_type = #tpu.core_type<tc>, window_params = [{transform_indices = @transform_0, window_bounds = array<i64: 1, 4, 256>}, {transform_indices = @transform_1, window_bounds = array<i64: 1, 4, 1>}]} {
    %c0_i32 = arith.constant 0 : i32
    %0 = arith.cmpi eq, %arg1, %c0_i32 : i32
    %1 = arith.extui %0 : i1 to i32
    %c0_i32_0 = arith.constant 0 : i32
    %2 = arith.cmpi ne, %1, %c0_i32_0 : i32
    scf.if %2 {
      %cst_11 = arith.constant 0.000000e+00 : f32
      %12 = vector.broadcast %cst_11 : f32 to vector<1x4x1xf32>
      %c0_12 = arith.constant 0 : index
      %c0_13 = arith.constant 0 : index
      %c0_14 = arith.constant 0 : index
      %13 = vector.load %arg4[%c0_12, %c0_13, %c0_14] : memref<1x4x1xf32, #tpu.memory_space<vmem>>, vector<1x4x1xf32>
      tpu.vector_store %arg4[%c0_12, %c0_13, %c0_14], %12 {strides = array<i32>} : memref<1x4x1xf32, #tpu.memory_space<vmem>>, vector<1x4x1xf32>,
    } else {
    }
    %c0 = arith.constant 0 : index
    %c0_1 = arith.constant 0 : index
    %c0_2 = arith.constant 0 : index
    %3 = vector.load %arg4[%c0, %c0_1, %c0_2] : memref<1x4x1xf32, #tpu.memory_space<vmem>>, vector<1x4x1xf32>
    %c0_3 = arith.constant 0 : index
    %c0_4 = arith.constant 0 : index
    %c0_5 = arith.constant 0 : index
    %4 = vector.load %arg2[%c0_3, %c0_4, %c0_5] : memref<1x4x256xf32, #tpu.memory_space<vmem>>, vector<1x4x256xf32>
    %cst = arith.constant dense<0.000000e+00> : vector<1x4xf32>
    %5 = vector.multi_reduction <add>, %4, %cst [2] : vector<1x4x256xf32> to vector<1x4xf32>
    %6 = vector.shape_cast %5 : vector<1x4xf32> to vector<1x4x1xf32>
    %7 = arith.addf %3, %6 : vector<1x4x1xf32>
    %c0_6 = arith.constant 0 : index
    %c0_7 = arith.constant 0 : index
    %c0_8 = arith.constant 0 : index
    %8 = vector.load %arg4[%c0_6, %c0_7, %c0_8] : memref<1x4x1xf32, #tpu.memory_space<vmem>>, vector<1x4x1xf32>
    tpu.vector_store %arg4[%c0_6, %c0_7, %c0_8], %7 {strides = array<i32>} : memref<1x4x1xf32, #tpu.memory_space<vmem>>, vector<1x4x1xf32>,
    %c0_i32_9 = arith.constant 0 : i32
    %9 = arith.cmpi eq, %arg1, %c0_i32_9 : i32
    %10 = arith.extui %9 : i1 to i32
    %c0_i32_10 = arith.constant 0 : i32
    %11 = arith.cmpi ne, %10, %c0_i32_10 : i32
    scf.if %11 {
      %c0_11 = arith.constant 0 : index
      %c0_12 = arith.constant 0 : index
      %c0_13 = arith.constant 0 : index
      %12 = vector.load %arg4[%c0_11, %c0_12, %c0_13] : memref<1x4x1xf32, #tpu.memory_space<vmem>>, vector<1x4x1xf32>
      %cst_14 = arith.constant 3.906250e-03 : f32
      %13 = vector.broadcast %cst_14 : f32 to vector<1x4x1xf32>
      %14 = arith.mulf %12, %13 : vector<1x4x1xf32>
      %15 = arith.mulf %14, %14 : vector<1x4x1xf32>
      %cst_15 = arith.constant dense<0.000000e+00> : vector<1x1xf32>
      %16 = vector.multi_reduction <add>, %15, %cst_15 [1] : vector<1x4x1xf32> to vector<1x1xf32>
      %17 = vector.shape_cast %16 : vector<1x1xf32> to vector<1x1x1xf32>
      %18 = math.rsqrt %17 : vector<1x1x1xf32>
      %19 = vector.broadcast %18 : vector<1x1x1xf32> to vector<1x4x1xf32>
      %20 = arith.mulf %14, %19 : vector<1x4x1xf32>
      %c0_16 = arith.constant 0 : index
      %c0_17 = arith.constant 0 : index
      %c0_18 = arith.constant 0 : index
      %21 = vector.load %arg3[%c0_16, %c0_17, %c0_18] : memref<1x4x1xf32, #tpu.memory_space<vmem>>, vector<1x4x1xf32>
      tpu.vector_store %arg3[%c0_16, %c0_17, %c0_18], %20 {strides = array<i32>} : memref<1x4x1xf32, #tpu.memory_space<vmem>>, vector<1x4x1xf32>,
    } else {
    }
    return
  }
  func.func @transform_0(%arg0: i32, %arg1: i32) -> (i32, i32, i32) {
    %c0_i32 = arith.constant 0 : i32
    %c0_i32_0 = arith.constant 0 : i32
    return %arg0, %c0_i32, %arg1 : i32, i32, i32
  }
  func.func @transform_1(%arg0: i32, %arg1: i32) -> (i32, i32, i32) {
    %c0_i32 = arith.constant 0 : i32
    %c0_i32_0 = arith.constant 0 : i32
    %c0_i32_1 = arith.constant 0 : i32
    return %arg0, %c0_i32, %c0_i32_0 : i32, i32, i32
  }
}

</mosaic_0001>

<bundles_post_ra>
// kernel: tpu_custom_call.1
= control target key start
LH: loop header
LB: loop body
LE: loop exit
PB: predicated region body
PF: predicated region fallthrough
CT: control target
= control target key end

     0   :  { %6 = vsyncpa [#allocation4], 0  ;;  %s530_s0 = inlined_call_operand.hbm [shape: f32[2,4,256], index: 0, kind: input, shape index: {}]   ;;  %s531_s1 = inlined_call_operand.vmem [shape: f32[2,4,1], index: 1, kind: output, shape index: {}]  }
   0x1   :  { %8 = vsyncpa [#allocation4 + $0x1], 0  ;;  %s426_s6 = smov 0   ;;  %s428_s7 = smov 0  }
   0x2   :  { %s430_s8 = smov 0   ;;  %s432_s9 = smov 0  }
   0x3   :  { %s434_s10 = smov 0   ;;  %s436_s11 = smov 0  }
   0x4 LB: > { %s262_s12 = sadd.s32 4294967295, %s412_s11   ;;  %s26_s13 = sadd.s32 1, %s408_s10  ;;  %s412_s11 = sphi %s436_s11, %s14_s11   ;;  %s408_s10 = sphi %s434_s10, %s539_s10   ;;  %s404_s9 = sphi %s432_s9, %s538_s9   ;;  %s400_s8 = sphi %s430_s8, %s537_s8   ;;  %s396_s7 = sphi %s428_s7, %s536_s7   ;;  %s392_s6 = sphi %s426_s6, %s535_s6  }
   0x5   : > { %p28_p0 = scmp.ge.s32.totalorder %s26_s13, 2  ;;  %s35_s14 = sadd.s32 1, %s400_s8 }
   0x6   : > { %p42_p1 = scmp.ne.s32.totalorder %s400_s8, %s396_s7  ;;  %p43_p2 = scmp.eq.s32.totalorder %s412_s11, 0 }
   0x7   : > { %s541_s13 = smov (%p28_p0, %s26_s13), 0  ;;  %p48_p4 = scmp.ne.s32.totalorder %s396_s7, %s392_s6 }
   0x8   : > { %p462_p3 = por %p43_p2, %p42_p1  ;;  %s30_s16 = ssub.s32 %s408_s10, %s541_s13 }
   0x9   : > { %p49_p5 = scmp.eq.s32.totalorder %s262_s12, 0  ;;  %p33_p6 = scmp.eq.s32.totalorder %s30_s16, 0 }
   0xa   : > { %p281_p8 = scmp.lt.s32.totalorder %s412_s11, 2  ;;  %s98_s19 = sand.u32 1, %s400_s8  }
   0xb   : > { %p469_p7 = por %p49_p5, %p48_p4  ;;  %s274_s20 = sshll.u32 %s408_s10, 7 }
   0xc   : > { %s475_s18 = scalar_select %p33_p6, %s400_s8, %s35_s14  }
   0xd   : > { %s266_s21 = sshll.u32 %s98_s19, 3  ;;  %s110_s24 = scalar_lea.hbm %s530_s0, %s274_s20 }
   0xe   : > { %s102_s25 = scalar_lea.vmem [#allocation3], %s266_s21  ;;  %p484_p9 = pnand %p281_p8, %p462_p3 }
   0xf   : > { %s112_s26 = sshll.u32 %s102_s25, 4  ;;  %p269_p10 = scmp.ge.s32.totalorder %s412_s11, 1  ;;  %s113_s26 = int_to_ptr.vmem [resolvable:$true] %s112_s26 }
  0x10   : > { %p117_p11 = scmp.lt.s32.totalorder %s412_s11, 3  ;;  %s99_s28 = scalar_lea.sflag [#allocation4], %s98_s19 }
  0x11   : > { %p336_p12 = pneg %p484_p9  ;;  %s347_s29 = scalar_lea.vmem %s113_s26, 128 }
  0x12   : > { %p348_p13 = scmp.ne.s32.totalorder %s113_s26, %s347_s29  ;;  %s414_s30 = smov [#allocation3]  }
  0x13   : > { %s352_s2 = sshll.u32 %s414_s30, 4  ;;  %s353_s2 = int_to_ptr.vmem [resolvable:$false] %s352_s2 }
  0x14   : > { %p350_p0 = pnand %p348_p13, %p336_p12  ;;  %s354_s3 = scalar_lea.vmem %s353_s2, 256 }
  0x15   : > { %p355_p2 = scmp.lt.s32.totalorder %s113_s26, %s353_s2  ;;  %p356_p3 = scmp.lt.s32.totalorder %s354_s3, %s347_s29 }
  0x16   : > { %p351_p1 = pneg %p350_p0 }
  0x17   : > { %p357_p4 = por %p356_p3, %p355_p2 }
  0x19   : > { %p358_p5 = pnand %p357_p4, %p351_p1 }
  0x1b   : > { %361 = shalt.err (!%p358_p5)
}
  0x1c   : > { %280 = dma.hbm_to_vmem [thread:$0]  (!%p484_p9), %s110_s24, 128, %s113_s26, %s99_s28  }
  0x1d   : > { %p118_p6 = pnand %p269_p10, %p117_p11 }
  0x1e   : > { %s123_s4 = sand.u32 (!%p118_p6), 1, %s396_s7  }
  0x1f   : > { %121 = sbr.rel (%p118_p6) target bundleno = 225 (0xe1), region = 24  ;;  %s270_s5 = sshll.u32 (!%p118_p6), %s123_s4, 3 }
  0x20   : > { %s124_s6 = scalar_lea.sflag (!%p118_p6), [#allocation4], %s123_s4  ;;  %s127_s12 = scalar_lea.vmem (!%p118_p6), [#allocation3], %s270_s5 }
  0x24   : > { %387 = dma.done.wait (%p469_p7), %s124_s6, 128  }
  0x25   : > { %389 = vsyncadd (%p469_p7), %s124_s6, 4294967168  ;;  %vm154_vm0 = vcmask 3072   ;;  %v415_v0 = vmov 0.0   ;;  %vm161_vm1 = vcmask 1043456   ;;  %v157_v1 = vld [vmem:[%s127_s12] sm:$0xff]  ;;  %p146_p7 = scmp.lt.s32.totalorder %s404_s9, 1 }
  0x26   : > { %155 = vst.msk [vmem:[#allocation2] sm:$0xf] %vm154_vm0, %v415_v0  ;;  %v159_v2 = vcombine.high %v157_v1, %v157_v1  ;;  %v162_v3 = vsel %vm161_vm1, %v157_v1, 0.0 }
  0x27   : > { %s543_s9 = smov (!%p146_p7, %s404_s9), 1 }
  0x28   : > { %v163_v4 = vsel %vm161_vm1, %v159_v2, 0.0  ;;  %s271_s14 = sshll.u32 %s543_s9, 2 }
  0x29   : > { %v164_v5 = vadd.f32 %v163_v4, %v162_v3  ;;  %s149_s17 = scalar_lea.vmem %s531_s1, %s271_s14 }
  0x2b   : > { %165 = vadd.xlane.f32.xlu0 %v164_v5 }
  0x2d   : > { %v156_v6 = vld [vmem:[#allocation2] sm:$0xf] }
  0xb4   : > { %v166_v7 = vpop.xlane.xlu0 %165 }
  0xb5   : > { %v167_v8 = vadd.f32 %v166_v7, %v156_v6 }
  0xb7   : > { %169 = vst.msk [vmem:[#allocation2] sm:$0xf] %vm154_vm0, %v167_v8 }
  0xbe   : > { %v173_v9 = vld [vmem:[#allocation2] sm:$0xf] }
  0xbf   : > { %v174_v10 = vmul.f32 0.00390625, %v173_v9 }
  0xc1   : > { %v175_v11 = vmul.f32 %v174_v10, %v174_v10 }
  0xc3   : > { %v176_v12 = vsel %vm154_vm0, %v175_v11, 0.0 }
  0xc4   : > { %v177_v13 = vrot.slane %v176_v12, 4 }
  0xc6   : > { %v178_v14 = vadd.f32 %v177_v13, %v176_v12 }
  0xc8   : > { %v179_v15 = vrot.slane %v178_v14, 2 }
  0xca   : > { %v180_v16 = vadd.f32 %v179_v15, %v178_v14 }
  0xcc   : > { %v181_v17 = vrot.slane %v180_v16, 1 }
  0xce   : > { %v182_v18 = vadd.f32 %v181_v17, %v180_v16 }
  0xd0   : > { %332 = vrsqrt.f32 %v182_v18 }
  0xdd   : > { %v333_v19 = vpop.eup %332 }
  0xde   : > { %v184_v20 = vmul.f32 %v333_v19, %v174_v10 }
  0xe0   : > { %185 = vst.msk [vmem:[%s149_s17] sm:$0xf] %vm154_vm0, %v184_v20 }
  0xe1 PF: > { %s14_s11 = sadd.s32 1, %s412_s11   ;;  %s535_s6 = smov %s396_s7 }
  0xe2   : > { %p11_p8 = scmp.ge.s32.totalorder %s14_s11, 4   ;;  %s536_s7 = smov %s400_s8 }
  0xe3   : > { %s537_s8 = smov %s475_s18  ;;  %s538_s9 = smov %s408_s10 }
  0xe4   : > { %s539_s10 = smov %s541_s13  ;;  %13 = sbr.rel (!%p11_p8) target bundleno = 4 (0x4), region = 72 }
  0xe9   :  { %205 = vsyncpa [#allocation4], 1 }
  0xea   :  { %207 = vsyncpa [#allocation4 + $0x1], 1 }

</bundles_post_ra>
